<compile_context>
chip_gen: v7x
topology: tpu7x:2x2x1
jax: 0.10.0
libtpu: 0.0.40
codegen_flags: <defaults>
</compile_context>

<pallas_src>
import jax
import jax.numpy as jnp
from jax.experimental import pallas as pl
from jax.experimental.pallas import tpu as pltpu

# Scale class defaults (no learned parameters in this module).
B_SCALE = 1.0            # folded out of the kernel (== 1.0)
LOG_SPACE = False
RELATIVE = True
RELATIVE_EPS = 0.1
SOFT_CLAMP_VALUE = 5.0

_LANE = 128
_TARGET_ROWS = 2048      # 2048 x 128 f32 = 1 MiB per operand block


def _scale_loss_kernel(logs_ref, t_ref, out_ref):
    x = logs_ref[...]
    t = t_ref[...]

    # torch.nn.functional.softplus (beta=1, threshold=20): identity above 20,
    # log1p(exp(x)) below (numerically stable; min() protects the exp arg in
    # the not-taken branch of the select).
    s = jnp.where(x > 20.0, x, jnp.log1p(jnp.exp(jnp.minimum(x, 20.0))))

    # l1_loss(reduction='none'), then relative denominator b*(eps + t), b == 1.
    loss = jnp.abs(s - t) / (RELATIVE_EPS + t)

    # SoftClamp(max=5): x > max -> max + log(1 - max + x).  The maximum() guard
    # only protects the not-taken branch of the select from log(<=0).
    safe_arg = jnp.maximum(1.0 - SOFT_CLAMP_VALUE + loss, 1e-30)
    out_ref[...] = jnp.where(loss > SOFT_CLAMP_VALUE,
                             SOFT_CLAMP_VALUE + jnp.log(safe_arg),
                             loss)


def _pick_tile_rows(rows: int) -> int:
    """Large lane-dense tiles; keep >= 2 grid steps for v7x's two TCs."""
    if rows < 16:
        return rows                           # single full-extent block
    # ceil(rows / 2) rounded up to a sublane multiple (8), capped at the target.
    half = ((-(-rows // 2)) + 7) // 8 * 8
    return min(_TARGET_ROWS, half)


def scale_loss(logs: jax.Array, t: jax.Array) -> jax.Array:
    """Elementwise Scale loss. logs, t: same shape (e.g. NCHW), float32."""
    assert logs.shape == t.shape
    orig_shape = logs.shape
    dtype = logs.dtype
    n = logs.size

    flat_logs = logs.reshape(-1)
    flat_t = t.reshape(-1)

    rem = n % _LANE
    if rem:
        # Rare fallback: pad only the ragged tail to a full 128-lane row.
        # t padded with 1.0 keeps the denominator well defined.
        pad = _LANE - rem
        flat_logs = jnp.pad(flat_logs, (0, pad))
        flat_t = jnp.pad(flat_t, (0, pad), constant_values=1.0)

    rows = flat_logs.shape[0] // _LANE
    logs2d = flat_logs.reshape(rows, _LANE)   # layout-preserving (free) reshape
    t2d = flat_t.reshape(rows, _LANE)

    tile_rows = _pick_tile_rows(rows)
    grid = (pl.cdiv(rows, tile_rows),)        # partial last block is masked

    out2d = pl.pallas_call(
        _scale_loss_kernel,
        out_shape=jax.ShapeDtypeStruct((rows, _LANE), dtype),
        grid_spec=pltpu.PrefetchScalarGridSpec(
            num_scalar_prefetch=0,
            grid=grid,
            in_specs=[
                pl.BlockSpec((tile_rows, _LANE), lambda i: (i, 0)),
                pl.BlockSpec((tile_rows, _LANE), lambda i: (i, 0)),
            ],
            out_specs=pl.BlockSpec((tile_rows, _LANE), lambda i: (i, 0)),
        ),
        # 1 MiB blocks * 3 arrays * 2 pipeline buffers = 6 MiB < scoped-VMEM
        # defaults on every target chip -> no vmem_limit_bytes override needed.
        compiler_params=pltpu.CompilerParams(
            dimension_semantics=("parallel",)),
    )(logs2d, t2d)

    flat_out = out2d.reshape(-1)
    if rem:
        flat_out = flat_out[:n]
    return flat_out.reshape(orig_shape)


def _reference(logs, t):
    s = jax.nn.softplus(logs)
    loss = jnp.abs(s - t)
    loss = loss / (B_SCALE * (RELATIVE_EPS + t))
    return jnp.where(loss > SOFT_CLAMP_VALUE,
                     SOFT_CLAMP_VALUE + jnp.log(1.0 - SOFT_CLAMP_VALUE + loss),
                     loss)


if __name__ == "__main__":
    key = jax.random.PRNGKey(0)
    k1, k2, k3, k4 = jax.random.split(key, 4)

    # Case 1: NCHW inputs (batch=2, channels=4, spatial=16x16), lane-aligned.
    logs = jax.random.normal(k1, (2, 4, 16, 16), dtype=jnp.float32) * 3.0
    t = jax.random.uniform(k2, (2, 4, 16, 16), dtype=jnp.float32,
                           minval=0.05, maxval=4.0)
    out = scale_loss(logs, t)
    jax.block_until_ready(out)
    ref = _reference(logs, t)
    assert out.shape == (2, 4, 16, 16)
    assert jnp.allclose(out, ref, atol=1e-5, rtol=1e-5), (
        float(jnp.max(jnp.abs(out - ref))))

    # Case 2: ragged spatial size (exercises tail fallback + partial grid block).
    logs2 = jax.random.normal(k3, (2, 4, 17, 23), dtype=jnp.float32) * 3.0
    t2 = jax.random.uniform(k4, (2, 4, 17, 23), dtype=jnp.float32,
                            minval=0.05, maxval=4.0)
    out2 = scale_loss(logs2, t2)
    jax.block_until_ready(out2)
    ref2 = _reference(logs2, t2)
    assert out2.shape == (2, 4, 17, 23)
    assert jnp.allclose(out2, ref2, atol=1e-5, rtol=1e-5), (
        float(jnp.max(jnp.abs(out2 - ref2))))

    print("KERNEL_OK")
</pallas_src>

<mosaic_0001>
module attributes {stable_mosaic.version = 11 : i64} {
  func.func @_scale_loss_kernel(%arg0: i32, %arg1: memref<8x128xf32, #tpu.memory_space<vmem>>, %arg2: memref<8x128xf32, #tpu.memory_space<vmem>>, %arg3: memref<8x128xf32, #tpu.memory_space<vmem>>) attributes {dimension_semantics = [#tpu.dimension_semantics<parallel>], iteration_bounds = array<i64: 2>, scalar_prefetch = 0 : i64, scratch_operands = 0 : i64, tpu.core_type = #tpu.core_type<tc>, window_params = [{transform_indices = @transform_0, window_bounds = array<i64: 8, 128>}, {transform_indices = @transform_1, window_bounds = array<i64: 8, 128>}, {transform_indices = @transform_2, window_bounds = array<i64: 8, 128>}]} {
    %c0 = arith.constant 0 : index
    %c0_0 = arith.constant 0 : index
    %0 = vector.load %arg1[%c0, %c0_0] : memref<8x128xf32, #tpu.memory_space<vmem>>, vector<8x128xf32>
    %c0_1 = arith.constant 0 : index
    %c0_2 = arith.constant 0 : index
    %1 = vector.load %arg2[%c0_1, %c0_2] : memref<8x128xf32, #tpu.memory_space<vmem>>, vector<8x128xf32>
    %cst = arith.constant 2.000000e+01 : f32
    %2 = vector.broadcast %cst : f32 to vector<8x128xf32>
    %3 = arith.cmpf ogt, %0, %2 : vector<8x128xf32>
    %cst_3 = arith.constant 2.000000e+01 : f32
    %4 = vector.broadcast %cst_3 : f32 to vector<8x128xf32>
    %5 = arith.minimumf %0, %4 : vector<8x128xf32>
    %6 = math.exp %5 : vector<8x128xf32>
    %7 = math.log1p %6 : vector<8x128xf32>
    %8 = arith.select %3, %0, %7 : vector<8x128xi1>, vector<8x128xf32>
    %9 = arith.subf %8, %1 : vector<8x128xf32>
    %10 = math.absf %9 : vector<8x128xf32>
    %cst_4 = arith.constant 1.000000e-01 : f32
    %11 = vector.broadcast %cst_4 : f32 to vector<8x128xf32>
    %12 = arith.addf %11, %1 : vector<8x128xf32>
    %13 = arith.divf %10, %12 : vector<8x128xf32>
    %cst_5 = arith.constant -4.000000e+00 : f32
    %14 = vector.broadcast %cst_5 : f32 to vector<8x128xf32>
    %15 = arith.addf %14, %13 : vector<8x128xf32>
    %cst_6 = arith.constant 1.000000e-30 : f32
    %16 = vector.broadcast %cst_6 : f32 to vector<8x128xf32>
    %17 = arith.maximumf %15, %16 : vector<8x128xf32>
    %cst_7 = arith.constant 5.000000e+00 : f32
    %18 = vector.broadcast %cst_7 : f32 to vector<8x128xf32>
    %19 = arith.cmpf ogt, %13, %18 : vector<8x128xf32>
    %20 = math.log %17 : vector<8x128xf32>
    %cst_8 = arith.constant 5.000000e+00 : f32
    %21 = vector.broadcast %cst_8 : f32 to vector<8x128xf32>
    %22 = arith.addf %21, %20 : vector<8x128xf32>
    %23 = arith.select %19, %22, %13 : vector<8x128xi1>, vector<8x128xf32>
    %c0_9 = arith.constant 0 : index
    %c0_10 = arith.constant 0 : index
    %24 = vector.load %arg3[%c0_9, %c0_10] : memref<8x128xf32, #tpu.memory_space<vmem>>, vector<8x128xf32>
    tpu.vector_store %arg3[%c0_9, %c0_10], %23 {strides = array<i32>} : memref<8x128xf32, #tpu.memory_space<vmem>>, vector<8x128xf32>,
    return
  }
  func.func @transform_0(%arg0: i32) -> (i32, i32) {
    %c0_i32 = arith.constant 0 : i32
    %c0_i32_0 = arith.constant 0 : i32
    return %arg0, %c0_i32 : i32, i32
  }
  func.func @transform_1(%arg0: i32) -> (i32, i32) {
    %c0_i32 = arith.constant 0 : i32
    %c0_i32_0 = arith.constant 0 : i32
    return %arg0, %c0_i32 : i32, i32
  }
  func.func @transform_2(%arg0: i32) -> (i32, i32) {
    %c0_i32 = arith.constant 0 : i32
    %c0_i32_0 = arith.constant 0 : i32
    return %arg0, %c0_i32 : i32, i32
  }
}

</mosaic_0001>

<bundles_post_ra>
// kernel: tpu_custom_call.1
= control target key start
LH: loop header
LB: loop body
LE: loop exit
PB: predicated region body
PF: predicated region fallthrough
CT: control target
= control target key end

     0   :  { %7 = vsyncpa [#allocation3], 0  ;;  %s770_s0 = inlined_call_operand.hbm [shape: f32[16,128], index: 0, kind: input, shape index: {}]   ;;  %s771_s1 = inlined_call_operand.hbm [shape: f32[16,128], index: 1, kind: input, shape index: {}]   ;;  %s772_s2 = inlined_call_operand.hbm [shape: f32[16,128], index: 2, kind: output, shape index: {}]  }
   0x1   :  { %9 = vsyncpa [#allocation3 + $0x1], 0 }
   0x2   :  { %10 = vsyncpa [#allocation6], 0 }
   0x3   :  { %12 = vsyncpa [#allocation6 + $0x1], 0 }
   0x4   :  { %13 = vsyncpa [#allocation4], 0 }
   0x5   :  { %15 = vsyncpa [#allocation4 + $0x1], 0  ;;  %s556_s9 = smov 0   ;;  %s558_s10 = smov 0  }
   0x6   :  { %s560_s11 = smov 0   ;;  %s562_s12 = smov 0  }
   0x7 LB: > { %s577_s13 = sadd.s32 4294967295, %s536_s12   ;;  %s332_s14 = sadd.s32 4294967294, %s536_s12   ;;  %s536_s12 = sphi %s562_s12, %s791_s12   ;;  %s532_s11 = sphi %s560_s11, %s790_s11   ;;  %s528_s10 = sphi %s558_s10, %s789_s10   ;;  %s524_s9 = sphi %s556_s9, %s788_s9  }
   0x8   : > { %s581_s15 = sadd.s32 1, %s536_s12   ;;  %s28_s16 = sadd.s32 1, %s532_s11 }
   0x9   : > { %s25_s17 = ssub.s32 %s536_s12, %s581_s15  ;;  %p35_p0 = scmp.ne.s32.totalorder %s532_s11, %s528_s10 }
   0xa   : > { %p26_p1 = scmp.eq.s32.totalorder %s25_s17, 0  ;;  %p36_p2 = scmp.eq.s32.totalorder %s536_s12, 0 }
   0xb   : > { %p41_p3 = scmp.ne.s32.totalorder %s528_s10, %s524_s9  ;;  %p42_p4 = scmp.eq.s32.totalorder %s577_s13, 0 }
   0xc   : > { %s593_s18 = scalar_select %p26_p1, %s532_s11, %s28_s16  }
   0xd   : > { %p595_p5 = por %p36_p2, %p35_p0  ;;  %p599_p6 = por %p42_p4, %p41_p3 }
   0xe   : > { %p91_p7 = scmp.eq.s32.totalorder %s577_s13, 1  ;;  %p97_p8 = scmp.eq.s32.totalorder %s332_s14, 1 }
   0xf   : > { %s776_s20 = scalar_select %p599_p6, 1, 0 }
  0x10   : > { %p364_p10 = scmp.lt.s32.totalorder %s536_s12, 2  ;;  %p606_p11 = por %p91_p7, %p35_p0 }
  0x11   : > { %p610_p12 = por %p97_p8, %p41_p3  ;;  %s615_s23 = sand.u32 1, %s532_s11  }
  0x12   : > { %s777_s21 = scalar_select %p606_p11, 1, 0 }
  0x13   : > { %s778_s22 = scalar_select %p610_p12, 1, 0 }
  0x14   : > { %s336_s24 = sshll.u32 %s536_s12, 7  ;;  %s335_s25 = sshll.u32 %s615_s23, 3 }
  0x15   : > { %s624_s28 = scalar_lea.hbm %s770_s0, %s336_s24  ;;  %s121_s29 = scalar_lea.vmem [#allocation2], %s335_s25 }
  0x16   : > { %s128_s30 = sshll.u32 %s121_s29, 4  ;;  %p630_p13 = pnand %p364_p10, %p595_p5  ;;  %s634_s30 = int_to_ptr.vmem [resolvable:$true] %s128_s30 }
  0x17   : > { %s118_s4 = scalar_lea.sflag [#allocation3], %s615_s23  ;;  %s406_s5 = scalar_lea.hbm %s624_s28, 128 }
  0x18   : > { %p407_p2 = scmp.ne.s32.totalorder %s624_s28, %s406_s5  ;;  %p408_p3 = pneg %p630_p13 }
  0x19   : > { %s411_s8 = scalar_lea.hbm %s770_s0, 256  ;;  %p412_p5 = scmp.lt.u32.totalorder %s624_s28, %s770_s0 }
  0x1a   : > { %p409_p4 = pnand %p408_p3, %p407_p2  ;;  %p413_p8 = scmp.lt.u32.totalorder %s411_s8, %s406_s5 }
  0x1b   : > { %p415_p9 = scmp.lt.u32.totalorder %s406_s5, %s624_s28 }
  0x1c   : > { %p410_p7 = pneg %p409_p4  ;;  %p414_p10 = por %p413_p8, %p412_p5 }
  0x1e   : > { %p416_p0 = por %p415_p9, %p414_p10 }
  0x20   : > { %p417_p1 = pnand %p416_p0, %p410_p7 }
  0x22   : > { %420 = shalt.err (!%p417_p1)
}
  0x23   : > { %s421_s17 = scalar_lea.vmem %s634_s30, 128  ;;  %s538_s19 = smov [#allocation2]  }
  0x24   : > { %p422_p2 = scmp.ne.s32.totalorder %s634_s30, %s421_s17  ;;  %s426_s26 = sshll.u32 %s538_s19, 4  ;;  %s427_s26 = int_to_ptr.vmem [resolvable:$false] %s426_s26 }
  0x25   : > { %s428_s27 = scalar_lea.vmem %s427_s26, 256  ;;  %p429_p11 = scmp.lt.s32.totalorder %s634_s30, %s427_s26 }
  0x26   : > { %p424_p4 = pnand %p422_p2, %p408_p3  ;;  %p430_p5 = scmp.lt.s32.totalorder %s428_s27, %s421_s17 }
  0x28   : > { %p425_p12 = pneg %p424_p4  ;;  %p431_p8 = por %p430_p5, %p429_p11 }
  0x2a   : > { %p432_p9 = pnand %p431_p8, %p425_p12 }
  0x2c   : > { %435 = shalt.err (!%p432_p9)
}
  0x2d   : > { %356 = dma.hbm_to_vmem [thread:$0]  (!%p630_p13), %s624_s28, 128, %s634_s30, %s118_s4  }
  0x2e   : > { %p780_p0 = scmp.lt.s32.totalorder %s536_s12, 3  ;;  %p781_p1 = scmp.ge.s32.totalorder %s536_s12, 1 }
  0x2f   : > { %s677_s7 = scalar_lea.hbm %s771_s1, %s336_s24  ;;  %s139_s8 = scalar_lea.vmem [#allocation5], %s335_s25 }
  0x30   : > { %p668_p7 = pnand %p781_p1, %p780_p0  ;;  %s146_s14 = sshll.u32 %s139_s8, 4  ;;  %s147_s14 = int_to_ptr.vmem [resolvable:$true] %s146_s14 }
  0x31   : > { %s136_s28 = scalar_lea.sflag [#allocation6], %s615_s23  ;;  %s436_s30 = scalar_lea.hbm %s677_s7, 128 }
  0x32   : > { %s782_s29 = scalar_select %p668_p7, 1, 0 }
  0x33   : > { %p437_p11 = scmp.ne.s32.totalorder %s677_s7, %s436_s30  ;;  %s441_s24 = scalar_lea.hbm %s771_s1, 256 }
  0x34   : > { %p442_p2 = scmp.lt.u32.totalorder %s677_s7, %s771_s1  ;;  %p443_p4 = scmp.lt.u32.totalorder %s441_s24, %s436_s30 }
  0x35   : > { %p439_p12 = pnand %p437_p11, %p408_p3  ;;  %p445_p8 = scmp.lt.u32.totalorder %s436_s30, %s677_s7 }
  0x36   : > { %p444_p5 = por %p443_p4, %p442_p2 }
  0x37   : > { %p440_p10 = pneg %p439_p12 }
  0x38   : > { %p446_p9 = por %p445_p8, %p444_p5 }
  0x3a   : > { %p447_p0 = pnand %p446_p9, %p440_p10 }
  0x3c   : > { %450 = shalt.err (!%p447_p0)
}
  0x3d   : > { %s451_s23 = scalar_lea.vmem %s147_s14, 128  ;;  %s539_s25 = smov [#allocation5]  }
  0x3e   : > { %p452_p1 = scmp.ne.s32.totalorder %s147_s14, %s451_s23  ;;  %s456_s26 = sshll.u32 %s539_s25, 4  ;;  %s457_s26 = int_to_ptr.vmem [resolvable:$false] %s456_s26 }
  0x3f   : > { %s458_s27 = scalar_lea.vmem %s457_s26, 256  ;;  %p459_p6 = scmp.lt.s32.totalorder %s147_s14, %s457_s26 }
  0x40   : > { %p454_p11 = pnand %p452_p1, %p408_p3  ;;  %p460_p7 = scmp.lt.s32.totalorder %s458_s27, %s451_s23 }
  0x42   : > { %p455_p12 = pneg %p454_p11  ;;  %p461_p2 = por %p460_p7, %p459_p6 }
  0x44   : > { %p462_p4 = pnand %p461_p2, %p455_p12 }
  0x46   : > { %465 = shalt.err (!%p462_p4)
}
  0x47   : > { %359 = dma.hbm_to_vmem [thread:$0]  (!%p630_p13), %s677_s7, 128, %s147_s14, %s136_s28  }
  0x48   : > { %p783_p10 = scmp.ne.s32.totalorder %s782_s29, 0 }
  0x49   : > { %s704_s5 = sand.u32 (!%p783_p10), 1, %s528_s10   ;;  %p784_p6 = scmp.ne.s32.totalorder (!%p783_p10), %s776_s20, 0 }
  0x4a   : > { %155 = sbr.rel (%p783_p10) target bundleno = 157 (0x9d), region = 28  ;;  %s707_s6 = sshll.u32 (!%p783_p10), %s704_s5, 3 }
  0x4b   : > { %s158_s8 = scalar_lea.sflag (!%p783_p10), [#allocation3], %s704_s5  ;;  %s161_s30 = scalar_lea.vmem (!%p783_p10), [#allocation2], %s707_s6 }
  0x51   : > { %511 = dma.done.wait (%p784_p6), %s158_s8, 128  }
  0x52   : > { %513 = vsyncadd (%p784_p6), %s158_s8, 4294967168  ;;  %s167_s3 = scalar_lea.sflag [#allocation6], %s704_s5  ;;  %s170_s29 = scalar_lea.vmem [#allocation5], %s707_s6 }
  0x53   : > { %515 = dma.done.wait (%p784_p6), %s167_s3, 128  }
  0x54   : > { %517 = vsyncadd (%p784_p6), %s167_s3, 4294967168  ;;  %v196_v0 = vld [vmem:[%s161_s30] sm:$0xff]  ;;  %v197_v5 = vld [vmem:[%s170_s29] sm:$0xff]  ;;  %s195_s20 = scalar_lea.vmem [#allocation7], %s707_s6  ;;  %s344_s14 = sshll.u32 %s577_s13, 7 }
  0x55   : > { %v199_v1 = vmin.f32 %v196_v0, 20.0  ;;  %v214_v7 = vadd.f32 0.1, %v197_v5  ;;  %vm198_vm1 = vcmp.gt.f32.partialorder %v196_v0, 20.0  ;;  %s239_s7 = sshll.u32 %s195_s20, 4  ;;  %s728_s16 = scalar_lea.hbm %s772_s2, %s344_s14  ;;  %s723_s7 = int_to_ptr.vmem [resolvable:$true] %s239_s7 }
  0x56   : > { %s226_s24 = scalar_lea.sflag [#allocation4], %s704_s5  ;;  %s466_s17 = scalar_lea.vmem %s723_s7, 128 }
  0x57   : > { %v200_v2 = vmul.f32 1.442695, %v199_v1  ;;  %p467_p13 = scmp.ne.s32.totalorder %s723_s7, %s466_s17  ;;  %p785_p3 = scmp.ne.s32.totalorder %s777_s21, 0 }
  0x58   : > { %s540_s13 = smov [#allocation7]  }
  0x59   : > { %398 = vpow2.f32 %v200_v2  ;;  %p468_p7 = pnand %p467_p13, %p785_p3  ;;  %s470_s19 = sshll.u32 %s540_s13, 4  ;;  %s471_s19 = int_to_ptr.vmem [resolvable:$false] %s470_s19 }
  0x5a   : > { %s472_s23 = scalar_lea.vmem %s471_s19, 256  ;;  %p473_p8 = scmp.lt.s32.totalorder %s723_s7, %s471_s19 }
  0x5b   : > { %p469_p5 = pneg %p468_p7  ;;  %p474_p9 = scmp.lt.s32.totalorder %s472_s23, %s466_s17 }
  0x5d   : > { %p475_p0 = por %p474_p9, %p473_p8 }
  0x5f   : > { %p476_p1 = pnand %p475_p0, %p469_p5 }
  0x63   : > { %v399_v3 = vpop.eup %398 }
  0x64   : > { %v202_v4 = vadd.f32 1.0, %v399_v3  ;;  %v205_v6 = vmul.f32 -0.5, %v399_v3  ;;  %v208_v9 = vand.u32 2147483647, %v399_v3 }
  0x66   : > { %400 = vlog2.f32 %v202_v4  ;;  %v206_v8 = vadd.f32 1.0, %v205_v6  ;;  %vm209_vm0 = vcmp.lt.f32.partialorder %v208_v9, 0.0004427343 }
  0x67   : > { %402 = vrcp.f32 %v214_v7 }
  0x68   : > { %v207_v10 = vmul.f32 %v399_v3, %v206_v8 }
  0x70   : > { %v401_v11 = vpop.eup %400 }
  0x71   : > { %v204_v12 = vmul.f32 0.6931472, %v401_v11  ;;  %v403_v16 = vpop.eup %402 }
  0x73   : > { %v210_v13 = vsel %vm209_vm0, %v207_v10, %v204_v12 }
  0x74   : > { %v211_v14 = vsel %vm198_vm1, %v196_v0, %v210_v13 }
  0x75   : > { %v212_v15 = vsub.f32 %v211_v14, %v197_v5 }
  0x77   : > { %v213_v17 = vand.u32 2147483647, %v212_v15 }
  0x79   : > { %v216_v18 = vmul.f32 %v403_v16, %v213_v17 }
  0x7b   : > { %v217_v19 = vadd.f32 -4.0, %v216_v18  ;;  %vm219_vm2 = vcmp.gt.f32.partialorder %v216_v18, 5.0 }
  0x7d   : > { %v218_v20 = vmax.f32 %v217_v19, 1e-30 }
  0x7f   : > { %404 = vlog2.f32 %v218_v20 }
  0x89   : > { %v405_v21 = vpop.eup %404 }
  0x8a   : > { %v221_v22 = vmul.f32 0.6931472, %v405_v21 }
  0x8c   : > { %v222_v23 = vadd.f32 5.0, %v221_v22 }
  0x8e   : > { %v223_v24 = vsel %vm219_vm2, %v222_v23, %v216_v18 }
  0x8f   : > { %224 = vst [vmem:[%s195_s20] sm:$0xff] %v223_v24 }
  0x90   : > { %479 = shalt.err (!%p476_p1)
}
  0x91   : > { %s480_s25 = scalar_lea.hbm %s728_s16, 128  ;;  %s484_s5 = scalar_lea.hbm %s772_s2, 256 }
  0x92   : > { %p481_p11 = scmp.ne.s32.totalorder %s728_s16, %s480_s25  ;;  %p485_p4 = scmp.lt.u32.totalorder %s728_s16, %s772_s2 }
  0x93   : > { %p486_p10 = scmp.lt.u32.totalorder %s484_s5, %s480_s25  ;;  %p488_p13 = scmp.lt.u32.totalorder %s480_s25, %s728_s16 }
  0x94   : > { %p482_p12 = pnand %p481_p11, %p785_p3 }
  0x95   : > { %p487_p6 = por %p486_p10, %p485_p4 }
  0x96   : > { %p483_p2 = pneg %p482_p12 }
  0x97   : > { %p489_p7 = por %p488_p13, %p487_p6 }
  0x99   : > { %p490_p5 = pnand %p489_p7, %p483_p2 }
  0x9b   : > { %493 = shalt.err (!%p490_p5)
}
  0x9c   : > { %351 = dma.vmem_to_hbm [thread:$0]  (%p785_p3), %s723_s7, 128, %s728_s16, %s226_s24  }
  0x9d PF: > { %s251_s30 = sand.u32 1, %s524_s9   ;;  %p786_p8 = scmp.ne.s32.totalorder %s778_s22, 0 }
  0x9e   : > { %p787_p9 = scmp.ge.s32.totalorder %s536_s12, 2  ;;  %s252_s3 = scalar_lea.sflag [#allocation4], %s251_s30 }
  0xa0   : > { %p361_p0 = pnand %p787_p9, %p786_p8 }
  0xa2   : > { %519 = dma.done.wait (!%p361_p0), %s252_s3, 128  }
  0xa3   : > { %521 = vsyncadd (!%p361_p0), %s252_s3, 4294967168  ;;  %p18_p1 = scmp.ge.s32.totalorder %s581_s15, 4   ;;  %s788_s9 = smov %s528_s10 }
  0xa4   : > { %s789_s10 = smov %s532_s11  ;;  %s790_s11 = smov %s593_s18 }
  0xa5   : > { %s791_s12 = smov %s581_s15  ;;  %20 = sbr.rel (!%p18_p1) target bundleno = 7 (0x7), region = 86 }
  0xac   :  { %257 = vsyncpa [#allocation3], 1 }
  0xad   :  { %259 = vsyncpa [#allocation3 + $0x1], 1 }
  0xae   :  { %260 = vsyncpa [#allocation6], 1 }
  0xaf   :  { %262 = vsyncpa [#allocation6 + $0x1], 1 }
  0xb0   :  { %263 = vsyncpa [#allocation4], 1 }
  0xb1   :  { %265 = vsyncpa [#allocation4 + $0x1], 1 }

</bundles_post_ra>
